<compile_context>
chip_gen: v7x
topology: tpu7x:2x2x1
jax: 0.10.0
libtpu: 0.0.40
codegen_flags: <defaults>
</compile_context>

<pallas_src>
import functools

import jax
import jax.numpy as jnp
from jax.experimental import pallas as pl
from jax.experimental.pallas import tpu as pltpu

EPS = 1e-5
_TARGET_BLOCK_BYTES = 2 * 1024 * 1024     # ~2 MiB blocks: >=85% of HBM roofline
_FUSED_BLOCK_BYTES = 4 * 1024 * 1024      # max (N, td) block for the fused path
_TARGET_FEATURE_COLS = 1024               # feature-tile target (multiple of 128)


def _round_up(x, m):
    return (x + m - 1) // m * m


def _vmem_limit_bytes():
    """Generation-aware scoped-VMEM limit (v7x: 64 MiB physical; v5e/v6e: 128)."""
    try:
        cap = int(getattr(pltpu.get_tpu_info(), "vmem_capacity_bytes",
                          64 * 1024 * 1024))
    except Exception:  # pragma: no cover - conservative fallback
        cap = 64 * 1024 * 1024
    return min((cap * 3) // 4, 96 * 1024 * 1024)


def _pick_feature_tile(d_pad, target_cols=_TARGET_FEATURE_COLS):
    """Largest multiple of 128 <= target that divides d_pad (d_pad % 128 == 0)."""
    if d_pad <= target_cols:
        return d_pad
    td = (target_cols // 128) * 128
    while td >= 128:
        if d_pad % td == 0:
            return td
        td -= 128
    return 128


def _pick_batch_tile(n, td, itemsize, rows_align, target_bytes=_TARGET_BLOCK_BYTES):
    """Size the batch tile by bytes (~2 MiB blocks); never shrink for divisibility."""
    tb = (target_bytes // max(1, td * itemsize)) // rows_align * rows_align
    tb = max(tb, rows_align)
    if tb >= n:
        return n  # full-extent batch dim is always a legal block dim
    return tb


# --------------------------------------------------------------------------- #
# Kernels
# --------------------------------------------------------------------------- #
def _bn_stats_kernel(x_ref, g_ref, b_ref, stats_ref, *, n_rows, tile_rows, masked):
    """Phase 1: accumulate per-feature sum / sumsq over batch tiles; finalize to
    fused scale/shift on the last batch tile. stats_ref is a resident (2, td)
    f32 block: row 0 -> scale, row 1 -> shift (after finalize)."""
    ib = pl.program_id(1)          # batch (reduction) axis, last in the grid
    nb = pl.num_programs(1)

    @pl.when(ib == 0)
    def _init():
        stats_ref[...] = jnp.zeros_like(stats_ref)

    def _accum(xv):
        stats_ref[0:1, :] += jnp.sum(xv, axis=0, keepdims=True)
        stats_ref[1:2, :] += jnp.sum(xv * xv, axis=0, keepdims=True)

    x = x_ref[...].astype(jnp.float32)
    if masked:
        is_last = ib == nb - 1

        @pl.when(jnp.logical_not(is_last))
        def _full_tile():
            _accum(x)

        @pl.when(is_last)
        def _ragged_tile():
            # Cheap (tb, 1) mask, only evaluated on the final ragged tile.
            rows_left = n_rows - ib * tile_rows
            row = jax.lax.broadcasted_iota(jnp.int32, (x.shape[0], 1), 0)
            _accum(jnp.where(row < rows_left, x, 0.0))
    else:
        _accum(x)

    @pl.when(ib == nb - 1)
    def _finalize():
        inv_n = jnp.float32(1.0 / n_rows)
        mean = stats_ref[0:1, :] * inv_n
        var = jnp.maximum(stats_ref[1:2, :] * inv_n - mean * mean, 0.0)
        scale = g_ref[...] * jax.lax.rsqrt(var + EPS)   # rsqrt -> EUP slot
        stats_ref[0:1, :] = scale
        stats_ref[1:2, :] = b_ref[...] - mean * scale


def _bn_apply_kernel(x_ref, stats_ref, o_ref):
    """Phase 2: y = x * scale + shift (one FMA per element, lane-dense stores)."""
    x = x_ref[...].astype(jnp.float32)
    o_ref[...] = (x * stats_ref[0:1, :] + stats_ref[1:2, :]).astype(o_ref.dtype)


def _bn_fused_kernel(x_ref, g_ref, b_ref, o_ref, *, n_rows):
    """Single-pass path: whole batch of one feature tile is VMEM-resident, so x
    is read from HBM exactly once (stats + normalize in one kernel)."""
    x = x_ref[...].astype(jnp.float32)
    inv_n = jnp.float32(1.0 / n_rows)
    mean = jnp.sum(x, axis=0, keepdims=True) * inv_n
    var = jnp.maximum(jnp.sum(x * x, axis=0, keepdims=True) * inv_n - mean * mean, 0.0)
    scale = g_ref[...] * jax.lax.rsqrt(var + EPS)
    shift = b_ref[...] - mean * scale
    o_ref[...] = (x * scale + shift).astype(o_ref.dtype)


# --------------------------------------------------------------------------- #
# Wrapper
# --------------------------------------------------------------------------- #
def batch_norm1d_forward(x, gamma, beta, *, batch_tile=None, force_two_phase=False):
    """Training-mode BatchNorm1d over x: (N, dim). gamma/beta: (dim,)."""
    n, d = x.shape
    itemsize = jnp.dtype(x.dtype).itemsize
    rows_align = 8 * max(1, 4 // itemsize)       # 8 (f32), 16 (bf16), 32 (int8)
    vmem_limit = _vmem_limit_bytes()

    # Lane-dense stores: pad the feature axis to a multiple of 128.
    d_pad = _round_up(d, 128)
    if d_pad != d:
        x_p = jnp.pad(x, ((0, 0), (0, d_pad - d)))
        g_p = jnp.pad(gamma.astype(jnp.float32), (0, d_pad - d)).reshape(1, d_pad)
        b_p = jnp.pad(beta.astype(jnp.float32), (0, d_pad - d)).reshape(1, d_pad)
    else:
        x_p = x
        g_p = gamma.reshape(1, d_pad).astype(jnp.float32)
        b_p = beta.reshape(1, d_pad).astype(jnp.float32)

    # ---------------- Fused single-pass fast path ---------------- #
    if not force_two_phase and batch_tile is None and n * 128 * itemsize <= _FUSED_BLOCK_BYTES:
        td = _pick_feature_tile(d_pad)
        while td > 128 and n * td * itemsize > _FUSED_BLOCK_BYTES:
            td = _pick_feature_tile(d_pad, td - 128)
        nd = d_pad // td
        out_p = pl.pallas_call(
            functools.partial(_bn_fused_kernel, n_rows=n),
            out_shape=jax.ShapeDtypeStruct((n, d_pad), x.dtype),
            grid=(nd,),
            in_specs=[
                pl.BlockSpec((n, td), lambda j: (0, j)),   # x feature-tile (full batch)
                pl.BlockSpec((1, td), lambda j: (0, j)),   # gamma
                pl.BlockSpec((1, td), lambda j: (0, j)),   # beta
            ],
            out_specs=pl.BlockSpec((n, td), lambda j: (0, j)),
            compiler_params=pltpu.CompilerParams(
                dimension_semantics=("parallel",),
                vmem_limit_bytes=vmem_limit),
            cost_estimate=pl.CostEstimate(
                flops=5 * n * d_pad,
                transcendentals=d_pad,
                bytes_accessed=2 * n * d_pad * itemsize + 2 * d_pad * 4),
        )(x_p, g_p, b_p)
        return out_p[:, :d] if d_pad != d else out_p

    # ---------------- Two-phase path (large inputs) ---------------- #
    td = _pick_feature_tile(d_pad)
    nd = d_pad // td
    if batch_tile is not None:
        tb = int(batch_tile)
        tb = n if tb >= n else max(rows_align, (tb // rows_align) * rows_align)
    else:
        tb = _pick_batch_tile(n, td, itemsize, rows_align)
    nb = pl.cdiv(n, tb)
    masked = (n % tb) != 0

    # Phase 1: per-feature statistics -> fused scale/shift, resident accumulator.
    stats = pl.pallas_call(
        functools.partial(_bn_stats_kernel, n_rows=n, tile_rows=tb, masked=masked),
        out_shape=jax.ShapeDtypeStruct((2, d_pad), jnp.float32),
        grid=(nd, nb),                                        # D outer, batch last
        in_specs=[
            pl.BlockSpec((tb, td), lambda jd, ib: (ib, jd)),  # x tile
            pl.BlockSpec((1, td), lambda jd, ib: (0, jd)),    # gamma
            pl.BlockSpec((1, td), lambda jd, ib: (0, jd)),    # beta
        ],
        out_specs=pl.BlockSpec((2, td), lambda jd, ib: (0, jd)),  # resident over ib
        compiler_params=pltpu.CompilerParams(
            dimension_semantics=("parallel", "arbitrary"),
            vmem_limit_bytes=vmem_limit),
        cost_estimate=pl.CostEstimate(
            flops=3 * n * d_pad,
            transcendentals=d_pad,
            bytes_accessed=n * d_pad * itemsize + 4 * d_pad * 4),
    )(x_p, g_p, b_p)

    # Phase 2: y = x * scale + shift, fully parallel grid (megacore-friendly).
    out_p = pl.pallas_call(
        _bn_apply_kernel,
        out_shape=jax.ShapeDtypeStruct((n, d_pad), x.dtype),
        grid=(nb, nd),
        in_specs=[
            pl.BlockSpec((tb, td), lambda ib, jd: (ib, jd)),  # x tile
            pl.BlockSpec((2, td), lambda ib, jd: (0, jd)),    # fused scale/shift
        ],
        out_specs=pl.BlockSpec((tb, td), lambda ib, jd: (ib, jd)),
        compiler_params=pltpu.CompilerParams(
            dimension_semantics=("parallel", "parallel"),
            vmem_limit_bytes=vmem_limit),
        cost_estimate=pl.CostEstimate(
            flops=2 * n * d_pad,
            transcendentals=0,
            bytes_accessed=2 * n * d_pad * itemsize + 2 * d_pad * 4),
    )(x_p, stats)
    return out_p[:, :d] if d_pad != d else out_p


def _reference_forward(x, gamma, beta):
    """Plain-JAX reference mirroring PyTorch train-mode BN (biased variance)."""
    xf = x.astype(jnp.float32)
    mu = xf.mean(0, keepdims=True)
    var = ((xf - mu) ** 2).mean(0, keepdims=True)
    y = (xf - mu) / jnp.sqrt(var + EPS) * gamma.reshape(1, -1) + beta.reshape(1, -1)
    return y.astype(x.dtype)


if __name__ == "__main__":
    key = jax.random.PRNGKey(0)
    kx, kg, kb = jax.random.split(key, 3)

    dim = 128
    gamma = 1.0 + 0.1 * jax.random.normal(kg, (dim,), jnp.float32)
    beta = 0.1 * jax.random.normal(kb, (dim,), jnp.float32)

    cases = []
    # 1) Small input -> fused single-pass path (x read from HBM once).
    cases.append((jax.random.normal(kx, (32, dim), jnp.float32), gamma, beta, {}))
    # 2) Two-phase path with multi-tile accumulation and a ragged last batch tile.
    cases.append((jax.random.normal(kx, (30, dim), jnp.float32), gamma, beta,
                  dict(batch_tile=8, force_two_phase=True)))
    # 3) Feature dim not a multiple of 128 -> padded to lane-dense 128, sliced back.
    g3 = 1.0 + 0.1 * jax.random.normal(kg, (96,), jnp.float32)
    b3 = 0.1 * jax.random.normal(kb, (96,), jnp.float32)
    cases.append((jax.random.normal(kx, (24, 96), jnp.float32), g3, b3, {}))

    for xs, gs, bs, kwargs in cases:
        out = jax.block_until_ready(batch_norm1d_forward(xs, gs, bs, **kwargs))
        ref = _reference_forward(xs, gs, bs)
        assert out.shape == xs.shape
        err = float(jnp.max(jnp.abs(out - ref)))
        assert jnp.allclose(out, ref, atol=1e-4, rtol=1e-4), err

    print("KERNEL_OK")
</pallas_src>

<mosaic_0001>
module attributes {stable_mosaic.version = 11 : i64} {
  func.func @_bn_fused_kernel(%arg0: i32, %arg1: memref<32x128xf32, #tpu.memory_space<vmem>>, %arg2: memref<1x128xf32, #tpu.memory_space<vmem>>, %arg3: memref<1x128xf32, #tpu.memory_space<vmem>>, %arg4: memref<32x128xf32, #tpu.memory_space<vmem>>) attributes {dimension_semantics = [#tpu.dimension_semantics<parallel>], iteration_bounds = array<i64: 1>, scalar_prefetch = 0 : i64, scratch_operands = 0 : i64, tpu.core_type = #tpu.core_type<tc>, window_params = [{transform_indices = @transform_0, window_bounds = array<i64: 32, 128>}, {transform_indices = @transform_1, window_bounds = array<i64: 1, 128>}, {transform_indices = @transform_2, window_bounds = array<i64: 1, 128>}, {transform_indices = @transform_3, window_bounds = array<i64: 32, 128>}]} {
    %c0 = arith.constant 0 : index
    %c0_0 = arith.constant 0 : index
    %0 = vector.load %arg1[%c0, %c0_0] : memref<32x128xf32, #tpu.memory_space<vmem>>, vector<32x128xf32>
    %cst = arith.constant dense<0.000000e+00> : vector<128xf32>
    %1 = vector.multi_reduction <add>, %0, %cst [0] : vector<32x128xf32> to vector<128xf32>
    %2 = vector.shape_cast %1 : vector<128xf32> to vector<1x128xf32>
    %cst_1 = arith.constant 3.125000e-02 : f32
    %3 = vector.broadcast %cst_1 : f32 to vector<1x128xf32>
    %4 = arith.mulf %2, %3 : vector<1x128xf32>
    %5 = arith.mulf %0, %0 : vector<32x128xf32>
    %cst_2 = arith.constant dense<0.000000e+00> : vector<128xf32>
    %6 = vector.multi_reduction <add>, %5, %cst_2 [0] : vector<32x128xf32> to vector<128xf32>
    %7 = vector.shape_cast %6 : vector<128xf32> to vector<1x128xf32>
    %cst_3 = arith.constant 3.125000e-02 : f32
    %8 = vector.broadcast %cst_3 : f32 to vector<1x128xf32>
    %9 = arith.mulf %7, %8 : vector<1x128xf32>
    %10 = arith.mulf %4, %4 : vector<1x128xf32>
    %11 = arith.subf %9, %10 : vector<1x128xf32>
    %cst_4 = arith.constant 0.000000e+00 : f32
    %12 = vector.broadcast %cst_4 : f32 to vector<1x128xf32>
    %13 = arith.maximumf %11, %12 : vector<1x128xf32>
    %c0_5 = arith.constant 0 : index
    %c0_6 = arith.constant 0 : index
    %14 = vector.load %arg2[%c0_5, %c0_6] : memref<1x128xf32, #tpu.memory_space<vmem>>, vector<1x128xf32>
    %cst_7 = arith.constant 9.99999974E-6 : f32
    %15 = vector.broadcast %cst_7 : f32 to vector<1x128xf32>
    %16 = arith.addf %13, %15 : vector<1x128xf32>
    %17 = math.rsqrt %16 : vector<1x128xf32>
    %18 = arith.mulf %14, %17 : vector<1x128xf32>
    %c0_8 = arith.constant 0 : index
    %c0_9 = arith.constant 0 : index
    %19 = vector.load %arg3[%c0_8, %c0_9] : memref<1x128xf32, #tpu.memory_space<vmem>>, vector<1x128xf32>
    %20 = arith.mulf %4, %18 : vector<1x128xf32>
    %21 = arith.subf %19, %20 : vector<1x128xf32>
    %22 = vector.broadcast %18 : vector<1x128xf32> to vector<32x128xf32>
    %23 = arith.mulf %0, %22 : vector<32x128xf32>
    %24 = vector.broadcast %21 : vector<1x128xf32> to vector<32x128xf32>
    %25 = arith.addf %23, %24 : vector<32x128xf32>
    %c0_10 = arith.constant 0 : index
    %c0_11 = arith.constant 0 : index
    %26 = vector.load %arg4[%c0_10, %c0_11] : memref<32x128xf32, #tpu.memory_space<vmem>>, vector<32x128xf32>
    tpu.vector_store %arg4[%c0_10, %c0_11], %25 {strides = array<i32>} : memref<32x128xf32, #tpu.memory_space<vmem>>, vector<32x128xf32>,
    return
  }
  func.func @transform_0(%arg0: i32) -> (i32, i32) {
    %c0_i32 = arith.constant 0 : i32
    %c0_i32_0 = arith.constant 0 : i32
    return %c0_i32, %arg0 : i32, i32
  }
  func.func @transform_1(%arg0: i32) -> (i32, i32) {
    %c0_i32 = arith.constant 0 : i32
    %c0_i32_0 = arith.constant 0 : i32
    return %c0_i32, %arg0 : i32, i32
  }
  func.func @transform_2(%arg0: i32) -> (i32, i32) {
    %c0_i32 = arith.constant 0 : i32
    %c0_i32_0 = arith.constant 0 : i32
    return %c0_i32, %arg0 : i32, i32
  }
  func.func @transform_3(%arg0: i32) -> (i32, i32) {
    %c0_i32 = arith.constant 0 : i32
    %c0_i32_0 = arith.constant 0 : i32
    return %c0_i32, %arg0 : i32, i32
  }
}

</mosaic_0001>

<bundles_post_ra>
// kernel: tpu_custom_call.1
= control target key start
LH: loop header
LB: loop body
LE: loop exit
PB: predicated region body
PF: predicated region fallthrough
CT: control target
= control target key end

     0   :  { %8 = vsyncpa [#allocation3], 0  ;;  %s222_s0 = inlined_call_operand.hbm [shape: f32[32,128], index: 0, kind: input, shape index: {}]   ;;  %s223_s1 = inlined_call_operand.vmem [shape: f32[1,128], index: 1, kind: input, shape index: {}]   ;;  %s224_s2 = inlined_call_operand.vmem [shape: f32[1,128], index: 2, kind: input, shape index: {}]   ;;  %s225_s3 = inlined_call_operand.hbm [shape: f32[32,128], index: 3, kind: output, shape index: {}]  }
   0x1   :  { %9 = vsyncpa [#allocation4], 0  ;;  %s162_s12 = smov [#allocation2]   ;;  %s114_s16 = scalar_lea.hbm %s222_s0, 512 }
   0x2   :  { %s15_s13 = sshll.u32 %s162_s12, 4  ;;  %p115_p0 = scmp.ne.s32.totalorder %s222_s0, %s114_s16  ;;  %s16_s13 = int_to_ptr.vmem [resolvable:$true] %s15_s13 }
   0x3   :  { %p118_p1 = scmp.lt.u32.totalorder %s114_s16, %s222_s0 }
   0x5   :  { %p120_p2 = pnand %p118_p1, %p115_p0 }
   0x7   :  { %123 = shalt.err (!%p120_p2)
}
   0x8   :  { %s124_s21 = scalar_lea.vmem %s16_s13, 512  ;;  %p129_p4 = scmp.lt.s32.totalorder %s16_s13, %s16_s13 }
   0x9   :  { %p125_p3 = scmp.ne.s32.totalorder %s16_s13, %s124_s21  ;;  %p130_p5 = scmp.lt.s32.totalorder %s124_s21, %s124_s21 }
   0xb   :  { %p131_p6 = por %p130_p5, %p129_p4 }
   0xd   :  { %p132_p7 = pnand %p131_p6, %p125_p3 }
   0xf   :  { %135 = shalt.err (!%p132_p7)
}
  0x10   :  { %s163_s22 = smov 128   ;;  %s164_s23 = smov 8  }
  0x11   :  { %21 = dma.hbm_to_vmem [thread:$0]  %s222_s0, 512, %s16_s13, [#allocation3], %s163_s22, %s163_s22, %s164_s23  }
  0x12   :  { %158 = dma.done.wait [#allocation3], 512  }
  0x13   :  { %159 = vsyncadd [#allocation3], 4294966784  ;;  %v29_v0 = vld [vmem:[#allocation2] sm:$0xff]  ;;  %v30_v1 = vld [vmem:[#allocation2 + $0x8] sm:$0xff]  ;;  %v68_v32 = vlaneseq  ;;  %s165_s29 = smov [#allocation5]  }
  0x14   :  { %v31_v2 = vld [vmem:[#allocation2 + $0x10] sm:$0xff]  ;;  %v32_v3 = vld [vmem:[#allocation2 + $0x18] sm:$0xff]  ;;  %v33_v4 = vadd.f32 %v30_v1, %v29_v0  ;;  %v43_v5 = vmul.f32 %v29_v0, %v29_v0  ;;  %v44_v6 = vmul.f32 %v30_v1, %v30_v1  ;;  %v60_v34 = vld [vmem:[%s223_s1] sm:$0x1]  ;;  %s96_s30 = sshll.u32 %s165_s29, 4  ;;  %s97_s30 = int_to_ptr.vmem [resolvable:$true] %s96_s30 }
  0x15   :  { %v45_v7 = vmul.f32 %v31_v2, %v31_v2  ;;  %v46_v9 = vmul.f32 %v32_v3, %v32_v3  ;;  %v69_v33 = vshrl.u32 %v68_v32, 7  ;;  %v64_v38 = vld [vmem:[%s224_s2] sm:$0x1]  ;;  %s136_s1 = scalar_lea.vmem %s97_s30, 512  ;;  %p141_p9 = scmp.lt.s32.totalorder %s97_s30, %s97_s30 }
  0x16   :  { %v34_v8 = vadd.f32 %v33_v4, %v31_v2  ;;  %v47_v10 = vadd.f32 %v44_v6, %v43_v5  ;;  %p137_p8 = scmp.ne.s32.totalorder %s97_s30, %s136_s1  ;;  %p142_p10 = scmp.lt.s32.totalorder %s136_s1, %s136_s1 }
  0x17   :  { %v70_v35 = vsub.s32 0, %v69_v33 }
  0x18   :  { %v35_v11 = vadd.f32 %v34_v8, %v32_v3  ;;  %v48_v12 = vadd.f32 %v47_v10, %v45_v7  ;;  %p143_p11 = por %p142_p10, %p141_p9 }
  0x1a   :  { %v36_v13 = vrot.slane %v35_v11, 4  ;;  %v49_v14 = vadd.f32 %v48_v12, %v46_v9  ;;  %p144_p12 = pnand %p143_p11, %p137_p8 }
  0x1c   :  { %v37_v15 = vadd.f32 %v36_v13, %v35_v11  ;;  %v50_v16 = vrot.slane %v49_v14, 4 }
  0x1e   :  { %v38_v17 = vrot.slane %v37_v15, 2  ;;  %v51_v18 = vadd.f32 %v50_v16, %v49_v14 }
  0x20   :  { %v39_v19 = vadd.f32 %v38_v17, %v37_v15  ;;  %v52_v20 = vrot.slane %v51_v18, 2 }
  0x22   :  { %v40_v21 = vrot.slane %v39_v19, 1  ;;  %v53_v22 = vadd.f32 %v52_v20, %v51_v18 }
  0x24   :  { %v41_v23 = vadd.f32 %v40_v21, %v39_v19  ;;  %v54_v24 = vrot.slane %v53_v22, 1 }
  0x26   :  { %v42_v25 = vmul.f32 0.03125, %v41_v23  ;;  %v55_v26 = vadd.f32 %v54_v24, %v53_v22 }
  0x28   :  { %v56_v27 = vmul.f32 0.03125, %v55_v26  ;;  %v57_v28 = vmul.f32 %v42_v25, %v42_v25 }
  0x2a   :  { %v58_v29 = vsub.f32 %v56_v27, %v57_v28 }
  0x2c   :  { %v59_v30 = vmax.f32 %v58_v29, 0.0 }
  0x2e   :  { %v61_v31 = vadd.f32 1e-05, %v59_v30 }
  0x30   :  { %112 = vrsqrt.f32 %v61_v31 }
  0x3a   :  { %v113_v36 = vpop.eup %112 }
  0x3b   :  { %v63_v37 = vmul.f32 %v113_v36, %v60_v34 }
  0x3d   :  { %v65_v39 = vmul.f32 %v63_v37, %v42_v25  ;;  %v71_v40 = vrot.slane %v63_v37, %v70_v35 }
  0x3f   :  { %v66_v41 = vsub.f32 %v64_v38, %v65_v39  ;;  %v73_v42 = vmul.f32 %v71_v40, %v29_v0  ;;  %v74_v43 = vmul.f32 %v71_v40, %v30_v1  ;;  %v75_v44 = vmul.f32 %v71_v40, %v31_v2 }
  0x40   :  { %v76_v45 = vmul.f32 %v71_v40, %v32_v3 }
  0x41   :  { %v81_v46 = vrot.slane %v66_v41, %v70_v35 }
  0x43   :  { %v83_v47 = vadd.f32 %v81_v46, %v73_v42  ;;  %v84_v48 = vadd.f32 %v81_v46, %v74_v43  ;;  %v85_v49 = vadd.f32 %v81_v46, %v75_v44  ;;  %v86_v50 = vadd.f32 %v81_v46, %v76_v45 }
  0x45   :  { %87 = vst [vmem:[#allocation5] sm:$0xff] %v83_v47  ;;  %88 = vst [vmem:[#allocation5 + $0x8] sm:$0xff] %v84_v48 }
  0x46   :  { %89 = vst [vmem:[#allocation5 + $0x10] sm:$0xff] %v85_v49  ;;  %90 = vst [vmem:[#allocation5 + $0x18] sm:$0xff] %v86_v50 }
  0x47   :  { %147 = shalt.err (!%p144_p12)
}
  0x48   :  { %s148_s5 = scalar_lea.hbm %s225_s3, 512 }
  0x49   :  { %p149_p13 = scmp.ne.s32.totalorder %s225_s3, %s148_s5  ;;  %p152_p0 = scmp.lt.u32.totalorder %s148_s5, %s225_s3 }
  0x4b   :  { %p154_p1 = pnand %p152_p0, %p149_p13 }
  0x4d   :  { %157 = shalt.err (!%p154_p1)
}
  0x4e   :  { %102 = dma.vmem_to_hbm [thread:$0]  %s97_s30, 512, %s225_s3, [#allocation4], %s163_s22, %s163_s22, %s164_s23  }
  0x4f   :  { %160 = dma.done.wait [#allocation4], 512  }
  0x50   :  { %161 = vsyncadd [#allocation4], 4294966784 }
  0x51   :  { %106 = vsyncpa [#allocation3], 1 }
  0x52   :  { %107 = vsyncpa [#allocation4], 1 }

</bundles_post_ra>
